<compile_context>
chip_gen: v6e
topology: v6e:2x2x1
jax: 0.10.0
libtpu: 0.0.40
codegen_flags: <defaults>
</compile_context>

<pallas_src>
import functools

import jax
import jax.numpy as jnp
from jax.experimental import pallas as pl
from jax.experimental.pallas import tpu as pltpu

# torchani.utils.PERIODIC_TABLE (118 elements)
PERIODIC_TABLE = (
    "H He Li Be B C N O F Ne Na Mg Al Si P S Cl Ar K Ca Sc Ti V Cr Mn Fe Co Ni "
    "Cu Zn Ga Ge As Se Br Kr Rb Sr Y Zr Nb Mo Tc Ru Rh Pd Ag Cd In Sn Sb Te I "
    "Xe Cs Ba La Ce Pr Nd Pm Sm Eu Gd Tb Dy Ho Er Tm Yb Lu Hf Ta W Re Os Ir Pt "
    "Au Hg Tl Pb Bi Po At Rn Fr Ra Ac Th Pa U Np Pu Am Cm Bk Cf Es Fm Md No Lr "
    "Rf Db Sg Bh Hs Mt Ds Rg Cn Nh Fl Mc Lv Ts Og"
).split()

TABLE_LEN = len(PERIODIC_TABLE) + 2   # maxidx + 2 = 120
LANES = 128
SUBLANES = 8


def build_species_pairs(species):
    """Static (atomic_number, 0-based index) pairs, mirroring SpeciesConverter.__init__."""
    rev_idx = {s: k for k, s in enumerate(PERIODIC_TABLE, 1)}
    return tuple((rev_idx[s], i) for i, s in enumerate(species))


def build_conv_tensor(species):
    """Reference lookup table (for the XLA path / the pure-JAX check)."""
    conv = [-1] * TABLE_LEN
    for z, i in build_species_pairs(species):
        conv[z] = i
    return jnp.asarray(conv, dtype=jnp.int32)


def _species_convert_kernel(sp_ref, out_ref, *, pairs, table_len, strict):
    # sp_ref / out_ref : (tile_m, C) int32 tiles.
    sp = sp_ref[...]
    if strict:
        # Exact PyTorch negative-index wrapping (conv_tensor[-k] semantics).
        idx = jnp.where(sp < 0, sp + table_len, sp)
    else:
        # Fast path: all requested Z >= 1, so -1 padding (and any negative /
        # out-of-table value) falls through to -1 via the default below.
        idx = sp
    out = jnp.full_like(sp, -1)
    for z, i in pairs:   # trace-time-unrolled compare/select sweep
        out = jnp.where(idx == jnp.int32(z), jnp.int32(i), out)
    out_ref[...] = out


def _pick_tile_rows(rows, cols, itemsize=4):
    """Row-tile: multiple of 8 sublanes, ~<=1 MiB per block, >=4 grid steps when big."""
    if rows <= SUBLANES:
        return rows                                   # full dim satisfies tiling rule
    cap = max(SUBLANES, ((1 << 20) // max(cols * itemsize, 1)) // SUBLANES * SUBLANES)
    target = ((rows + 3) // 4 + SUBLANES - 1) // SUBLANES * SUBLANES
    return int(min(cap, max(SUBLANES, target)))


def _relabel_2d(x2d, pairs, strict):
    """Run the relabel kernel on a 2D int32 array, in place layout-wise."""
    rows, cols = x2d.shape
    tile_m = _pick_tile_rows(rows, cols)
    grid_m = pl.cdiv(rows, tile_m)                    # ragged tail -> masked partial block
    kernel = functools.partial(_species_convert_kernel, pairs=pairs,
                               table_len=TABLE_LEN, strict=strict)
    return pl.pallas_call(
        kernel,
        out_shape=jax.ShapeDtypeStruct((rows, cols), jnp.int32),
        grid=(grid_m,),
        in_specs=[pl.BlockSpec((tile_m, cols), lambda i: (i, 0))],
        out_specs=pl.BlockSpec((tile_m, cols), lambda i: (i, 0)),
        compiler_params=pltpu.CompilerParams(dimension_semantics=("parallel",)),
    )(x2d)


def species_converter_forward(species, coordinates, species_order, *,
                              force_pallas=False,
                              min_pallas_elems=256 * 1024,
                              strict_negative_indexing=False):
    """Pallas-backed equivalent of SpeciesConverter.forward.

    species       : (B, A) int array of atomic numbers (-1 = padding atom)
    coordinates   : (B, A, 3) float array, passed through unchanged
    species_order : static Python list of element symbols (module "parameter")
    """
    B, A = species.shape
    sp = species.astype(jnp.int32)
    pairs = build_species_pairs(species_order)
    total = B * A

    if total < min_pallas_elems and not force_pallas:
        # Small/medium inputs: a standalone memory-bound kernel cannot beat the
        # plain XLA gather on the native layout (and the real win is fusing the
        # relabel into the downstream AEV/neighbor kernel anyway).
        conv = build_conv_tensor(species_order)
        wrapped = jnp.where(sp < 0, sp + TABLE_LEN, sp)
        return conv[wrapped], coordinates

    if total % LANES == 0:
        # Free bitcast-reshape to a lane-dense (rows, 128) layout: full
        # unmasked 8x128 vector stores, no pad pass, no output slice.
        rows = total // LANES
        out2d = _relabel_2d(sp.reshape(rows, LANES), pairs, strict_negative_indexing)
        converted = out2d.reshape(B, A)
    else:
        # Native (B, A) layout; block last dim == full A, ragged row tail is a
        # masked partial last block (no whole-array padding pass).
        converted = _relabel_2d(sp, pairs, strict_negative_indexing)

    # Coordinates pass through untouched (pure glue, as in the PyTorch module).
    return converted, coordinates


def _reference(species, species_order):
    conv = build_conv_tensor(species_order)
    wrapped = jnp.where(species < 0, species + TABLE_LEN, species)
    return conv[wrapped]


if __name__ == "__main__":
    key = jax.random.PRNGKey(0)
    species_order = ["H", "C", "N", "O"]          # classic ANI element set
    choices = jnp.asarray([1, 6, 7, 8, -1], dtype=jnp.int32)

    # Case 1: native-layout path (B*A not a multiple of 128).
    B1, A1 = 2, 8
    k1, k2, k3, k4 = jax.random.split(key, 4)
    species1 = jax.random.choice(k1, choices, shape=(B1, A1))
    coords1 = jax.random.normal(k2, (B1, A1, 3), dtype=jnp.float32)

    out_sp1, out_xyz1 = species_converter_forward(
        species1, coords1, species_order, force_pallas=True)
    out_sp1 = jax.block_until_ready(out_sp1)
    out_xyz1 = jax.block_until_ready(out_xyz1)
    assert out_sp1.shape == (B1, A1) and out_sp1.dtype == jnp.int32
    assert bool(jnp.all(out_sp1 == _reference(species1, species_order)))
    assert bool(jnp.all(out_xyz1 == coords1))

    # Case 2: lane-dense path (B*A multiple of 128 -> free reshape, no copies).
    B2, A2 = 4, 96
    species2 = jax.random.choice(k3, choices, shape=(B2, A2))
    coords2 = jax.random.normal(k4, (B2, A2, 3), dtype=jnp.float32)

    out_sp2, out_xyz2 = species_converter_forward(
        species2, coords2, species_order, force_pallas=True)
    out_sp2 = jax.block_until_ready(out_sp2)
    out_xyz2 = jax.block_until_ready(out_xyz2)
    assert out_sp2.shape == (B2, A2) and out_sp2.dtype == jnp.int32
    assert bool(jnp.all(out_sp2 == _reference(species2, species_order)))
    assert bool(jnp.all(out_xyz2 == coords2))

    print("KERNEL_OK")
</pallas_src>

<mosaic_0001>
module attributes {stable_mosaic.version = 11 : i64} {
  func.func @_species_convert_kernel(%arg0: i32, %arg1: memref<2x8xi32, #tpu.memory_space<vmem>>, %arg2: memref<2x8xi32, #tpu.memory_space<vmem>>) attributes {dimension_semantics = [#tpu.dimension_semantics<parallel>], iteration_bounds = array<i64: 1>, scalar_prefetch = 0 : i64, scratch_operands = 0 : i64, tpu.core_type = #tpu.core_type<tc>, window_params = [{transform_indices = @transform_0, window_bounds = array<i64: 2, 8>}, {transform_indices = @transform_1, window_bounds = array<i64: 2, 8>}]} {
    %c0 = arith.constant 0 : index
    %c0_0 = arith.constant 0 : index
    %0 = vector.load %arg1[%c0, %c0_0] : memref<2x8xi32, #tpu.memory_space<vmem>>, vector<2x8xi32>
    %c-1_i32 = arith.constant -1 : i32
    %1 = vector.broadcast %c-1_i32 : i32 to vector<2x8xi32>
    %c1_i32 = arith.constant 1 : i32
    %2 = vector.broadcast %c1_i32 : i32 to vector<2x8xi32>
    %3 = arith.cmpi eq, %0, %2 : vector<2x8xi32>
    %c0_i32 = arith.constant 0 : i32
    %4 = vector.broadcast %c0_i32 : i32 to vector<2x8xi32>
    %5 = arith.select %3, %4, %1 : vector<2x8xi1>, vector<2x8xi32>
    %c6_i32 = arith.constant 6 : i32
    %6 = vector.broadcast %c6_i32 : i32 to vector<2x8xi32>
    %7 = arith.cmpi eq, %0, %6 : vector<2x8xi32>
    %c1_i32_1 = arith.constant 1 : i32
    %8 = vector.broadcast %c1_i32_1 : i32 to vector<2x8xi32>
    %9 = arith.select %7, %8, %5 : vector<2x8xi1>, vector<2x8xi32>
    %c7_i32 = arith.constant 7 : i32
    %10 = vector.broadcast %c7_i32 : i32 to vector<2x8xi32>
    %11 = arith.cmpi eq, %0, %10 : vector<2x8xi32>
    %c2_i32 = arith.constant 2 : i32
    %12 = vector.broadcast %c2_i32 : i32 to vector<2x8xi32>
    %13 = arith.select %11, %12, %9 : vector<2x8xi1>, vector<2x8xi32>
    %c8_i32 = arith.constant 8 : i32
    %14 = vector.broadcast %c8_i32 : i32 to vector<2x8xi32>
    %15 = arith.cmpi eq, %0, %14 : vector<2x8xi32>
    %c3_i32 = arith.constant 3 : i32
    %16 = vector.broadcast %c3_i32 : i32 to vector<2x8xi32>
    %17 = arith.select %15, %16, %13 : vector<2x8xi1>, vector<2x8xi32>
    %c0_2 = arith.constant 0 : index
    %c0_3 = arith.constant 0 : index
    %18 = vector.load %arg2[%c0_2, %c0_3] : memref<2x8xi32, #tpu.memory_space<vmem>>, vector<2x8xi32>
    tpu.vector_store %arg2[%c0_2, %c0_3], %17 {strides = array<i32>} : memref<2x8xi32, #tpu.memory_space<vmem>>, vector<2x8xi32>,
    return
  }
  func.func @transform_0(%arg0: i32) -> (i32, i32) {
    %c0_i32 = arith.constant 0 : i32
    %c0_i32_0 = arith.constant 0 : i32
    return %arg0, %c0_i32 : i32, i32
  }
  func.func @transform_1(%arg0: i32) -> (i32, i32) {
    %c0_i32 = arith.constant 0 : i32
    %c0_i32_0 = arith.constant 0 : i32
    return %arg0, %c0_i32 : i32, i32
  }
}

</mosaic_0001>

<bundles_post_ra>
// kernel: tpu_custom_call.1
= control target key start
LH: loop header
LB: loop body
LE: loop exit
PB: predicated region body
PF: predicated region fallthrough
CT: control target
= control target key end

     0   :  { %6 = vsyncpa [#allocation3], 0  ;;  %s113_s0 = inlined_call_operand.hbm [shape: s32[2,8], index: 0, kind: input, shape index: {}]   ;;  %s114_s1 = inlined_call_operand.hbm [shape: s32[2,8], index: 1, kind: output, shape index: {}]  }
   0x1   :  { %7 = vsyncpa [#allocation4], 0  ;;  %s94_s6 = smov [#allocation2]  }
   0x2   :  { %s14_s7 = sshll.u32 %s94_s6, 4  ;;  %s15_s7 = int_to_ptr.vmem [resolvable:$true] %s14_s7 }
   0x3   :  { %s58_s8 = scalar_lea.vmem %s15_s7, 32  ;;  %p63_p1 = scmp.lt.s32.totalorder %s15_s7, %s15_s7 }
   0x4   :  { %p59_p0 = scmp.ne.s32.totalorder %s15_s7, %s58_s8  ;;  %p64_p2 = scmp.lt.s32.totalorder %s58_s8, %s58_s8 }
   0x6   :  { %p65_p3 = por %p64_p2, %p63_p1 }
   0x8   :  { %p66_p4 = pnand %p65_p3, %p59_p0 }
   0xa   :  { %69 = shalt.err (!%p66_p4)
}
   0xb   :  { %17 = dma.hbm_to_vmem [thread:$0]  %s113_s0, 32, %s15_s7, [#allocation3]  }
   0xc   :  { %90 = dma.done.wait [#allocation3], 32  }
   0xd   :  { %91 = vsyncadd [#allocation3], 4294967264  ;;  %v21_v0 = vld [vmem:[#allocation2] sm:$0x3]  ;;  %s95_s11 = smov [#allocation5]   ;;  %v96_v1 = vmov 4294967295  }
   0xe   :  { %vm22_vm0 = vcmp.eq.s32.totalorder %v21_v0, 1  ;;  %vm24_vm1 = vcmp.eq.s32.totalorder %v21_v0, 6  ;;  %vm26_vm2 = vcmp.eq.s32.totalorder %v21_v0, 7  ;;  %s38_s12 = sshll.u32 %s95_s11, 4  ;;  %vm28_vm3 = vcmp.eq.s32.totalorder %v21_v0, 8  ;;  %s39_s12 = int_to_ptr.vmem [resolvable:$true] %s38_s12 }
   0xf   :  { %v23_v2 = vsel %vm22_vm0, 0, %v96_v1  ;;  %vm30_vm4 = vcmask 58368   ;;  %s70_s13 = scalar_lea.vmem %s39_s12, 32  ;;  %p75_p6 = scmp.lt.s32.totalorder %s39_s12, %s39_s12 }
  0x10   :  { %v25_v3 = vsel %vm24_vm1, 1, %v23_v2  ;;  %p71_p5 = scmp.ne.s32.totalorder %s39_s12, %s70_s13  ;;  %p76_p7 = scmp.lt.s32.totalorder %s70_s13, %s70_s13 }
  0x11   :  { %v27_v4 = vsel %vm26_vm2, 2, %v25_v3 }
  0x12   :  { %v29_v5 = vsel %vm28_vm3, 3, %v27_v4  ;;  %p77_p8 = por %p76_p7, %p75_p6 }
  0x13   :  { %31 = vst.msk [vmem:[#allocation5] sm:$0x3] %vm30_vm4, %v29_v5 }
  0x14   :  { %p78_p9 = pnand %p77_p8, %p71_p5 }
  0x16   :  { %81 = shalt.err (!%p78_p9)
}
  0x17   :  { %41 = dma.vmem_to_hbm [thread:$0]  %s39_s12, 32, %s114_s1, [#allocation4]  }
  0x18   :  { %92 = dma.done.wait [#allocation4], 32  }
  0x19   :  { %93 = vsyncadd [#allocation4], 4294967264 }
  0x1a   :  { %45 = vsyncpa [#allocation3], 1 }
  0x1b   :  { %46 = vsyncpa [#allocation4], 1 }

</bundles_post_ra>
